<compile_context>
chip_gen: v7x
topology: tpu7x:2x2x1
jax: 0.10.0
libtpu: 0.0.40
codegen_flags: <defaults>
</compile_context>

<pallas_src>
import functools

import jax
import jax.numpy as jnp
from jax.experimental import pallas as pl
from jax.experimental.pallas import tpu as pltpu

LOG_STD_MIN = -20.0
LOG_STD_MAX = 2.0

HEAD_PAD = 128  # lane-dense padded width of the fused head output


def _round_up(n, m):
    return ((n + m - 1) // m) * m


def sac_actor_kernel(x_ref, w_in_ref, b_in_ref,
                     w1_ref, b1_ref, w2_ref, b2_ref,
                     wh_ref, bh_ref,
                     out_ref, *, action_dim):
    # --- encoder input projection + ReLU (bf16 MXU inputs, f32 accumulation) ---
    x = x_ref[...].astype(jnp.bfloat16)
    h = jnp.dot(x, w_in_ref[...], preferred_element_type=jnp.float32) + b_in_ref[...]
    h = jnp.maximum(h, 0.0)

    # --- residual block (num_blocks = 1) ---
    res = h
    t = jnp.dot(h.astype(jnp.bfloat16), w1_ref[...],
                preferred_element_type=jnp.float32) + b1_ref[...]
    t = jnp.maximum(t, 0.0)
    t = jnp.dot(t.astype(jnp.bfloat16), w2_ref[...],
                preferred_element_type=jnp.float32) + b2_ref[...]
    h = jnp.maximum(t + res, 0.0)

    # --- fused actor heads: one lane-dense (B, 128) matmul + store ---
    out = jnp.dot(h.astype(jnp.bfloat16), wh_ref[...],
                  preferred_element_type=jnp.float32) + bh_ref[...]

    # clamp only the logstd lanes [A, 2A); mean lanes pass through unchanged.
    lane = jax.lax.broadcasted_iota(jnp.int32, out.shape, 1)
    is_logstd = (lane >= action_dim) & (lane < 2 * action_dim)
    out_ref[...] = jnp.where(is_logstd, jnp.clip(out, LOG_STD_MIN, LOG_STD_MAX), out)


def prepare_params(params, obs_dim, action_dim):
    """One-time packing: bf16 weights, padded OBS dim, fused/padded head. Do NOT call per step."""
    obs_pad = _round_up(max(obs_dim, 128), 128)
    hidden = params["w_in"].shape[1]

    w_in = jnp.zeros((obs_pad, hidden), jnp.bfloat16)
    w_in = w_in.at[:obs_dim, :].set(params["w_in"].astype(jnp.bfloat16))

    # fused head: [wm | ws | zero-pad] -> (hidden, 128)
    w_head = jnp.zeros((hidden, HEAD_PAD), jnp.bfloat16)
    w_head = w_head.at[:, :action_dim].set(params["wm"].astype(jnp.bfloat16))
    w_head = w_head.at[:, action_dim:2 * action_dim].set(params["ws"].astype(jnp.bfloat16))

    b_head = jnp.zeros((1, HEAD_PAD), jnp.float32)
    b_head = b_head.at[:, :action_dim].set(params["bm"])
    b_head = b_head.at[:, action_dim:2 * action_dim].set(params["bs"])

    return dict(
        w_in=w_in, b_in=params["b_in"].astype(jnp.float32),
        w1=params["w1"].astype(jnp.bfloat16), b1=params["b1"].astype(jnp.float32),
        w2=params["w2"].astype(jnp.bfloat16), b2=params["b2"].astype(jnp.float32),
        w_head=w_head, b_head=b_head,
        obs_dim=obs_dim, obs_pad=obs_pad, action_dim=action_dim,
    )


def sac_actor_forward(x, kp):
    """Run the SAC_Actor forward pass. Returns (action_mean, action_logstd)."""
    B = x.shape[0]
    A = kp["action_dim"]
    obs_pad = kp["obs_pad"]

    # zero-pad the observation lane dim to an aligned width (numerically a no-op).
    x_pad = jnp.zeros((B, obs_pad), jnp.float32).at[:, :kp["obs_dim"]].set(x)

    args = (
        x_pad,
        kp["w_in"], kp["b_in"],
        kp["w1"], kp["b1"],
        kp["w2"], kp["b2"],
        kp["w_head"], kp["b_head"],
    )

    # ~0.3 MB of bf16 weights: everything fits in VMEM single-buffered -> full-array blocks.
    full_spec = lambda a: pl.BlockSpec(a.shape, lambda: (0,) * a.ndim)

    out = pl.pallas_call(
        functools.partial(sac_actor_kernel, action_dim=A),
        out_shape=jax.ShapeDtypeStruct((B, HEAD_PAD), jnp.float32),
        in_specs=[full_spec(a) for a in args],
        out_specs=pl.BlockSpec((B, HEAD_PAD), lambda: (0, 0)),
        compiler_params=pltpu.CompilerParams(vmem_limit_bytes=4 << 20),
    )(*args)

    return out[:, :A], out[:, A:2 * A]


def init_params(key, obs_dim, hidden, action_dim):
    """Deterministic synthetic parameter init (same role as nn.Linear defaults), f32 master copy."""
    ks = jax.random.split(key, 10)

    def lin(kw, kb, fan_in, fan_out):
        bound = 1.0 / jnp.sqrt(fan_in)
        w = jax.random.uniform(kw, (fan_in, fan_out), jnp.float32, -bound, bound)
        b = jax.random.uniform(kb, (1, fan_out), jnp.float32, -bound, bound)
        return w, b

    w_in, b_in = lin(ks[0], ks[1], obs_dim, hidden)
    w1, b1 = lin(ks[2], ks[3], hidden, hidden)
    w2, b2 = lin(ks[4], ks[5], hidden, hidden)
    wm, bm = lin(ks[6], ks[7], hidden, action_dim)
    ws, bs = lin(ks[8], ks[9], hidden, action_dim)
    return dict(w_in=w_in, b_in=b_in, w1=w1, b1=b1, w2=w2, b2=b2,
                wm=wm, bm=bm, ws=ws, bs=bs)


def reference_forward(x, p):
    """Plain-JAX reference mirroring the kernel's bf16-weight / f32-accumulate precision."""
    def bd(a, w):
        return jnp.dot(a.astype(jnp.bfloat16), w.astype(jnp.bfloat16),
                       preferred_element_type=jnp.float32)

    h = jnp.maximum(bd(x, p["w_in"]) + p["b_in"], 0.0)
    res = h
    t = jnp.maximum(bd(h, p["w1"]) + p["b1"], 0.0)
    t = bd(t, p["w2"]) + p["b2"]
    h = jnp.maximum(t + res, 0.0)
    mean = bd(h, p["wm"]) + p["bm"]
    logstd = jnp.clip(bd(h, p["ws"]) + p["bs"], LOG_STD_MIN, LOG_STD_MAX)
    return mean, logstd


if __name__ == "__main__":
    B, OBS_DIM, HIDDEN, ACTION_DIM = 8, 24, 256, 2

    key = jax.random.PRNGKey(0)
    k_x, k_p = jax.random.split(key)
    x = jax.random.normal(k_x, (B, OBS_DIM), jnp.float32)

    params = init_params(k_p, OBS_DIM, HIDDEN, ACTION_DIM)
    kernel_params = prepare_params(params, OBS_DIM, ACTION_DIM)  # one-time packing

    mean, logstd = sac_actor_forward(x, kernel_params)
    jax.block_until_ready((mean, logstd))

    mean_ref, logstd_ref = reference_forward(x, params)

    assert mean.shape == (B, ACTION_DIM) and logstd.shape == (B, ACTION_DIM)
    # bf16 weights/activations -> loosened tolerance vs the original 1e-4 f32 check.
    assert jnp.allclose(mean, mean_ref, atol=2e-2, rtol=2e-2), \
        f"mean mismatch: {jnp.max(jnp.abs(mean - mean_ref))}"
    assert jnp.allclose(logstd, logstd_ref, atol=2e-2, rtol=2e-2), \
        f"logstd mismatch: {jnp.max(jnp.abs(logstd - logstd_ref))}"
    assert bool(jnp.all(logstd <= LOG_STD_MAX)) and bool(jnp.all(logstd >= LOG_STD_MIN))

    print("KERNEL_OK")
</pallas_src>

<mosaic_0001>
module attributes {stable_mosaic.version = 11 : i64} {
  func.func @sac_actor_kernel(%arg0: memref<8x128xf32, #tpu.memory_space<vmem>>, %arg1: memref<128x256xbf16, #tpu.memory_space<vmem>>, %arg2: memref<1x256xf32, #tpu.memory_space<vmem>>, %arg3: memref<256x256xbf16, #tpu.memory_space<vmem>>, %arg4: memref<1x256xf32, #tpu.memory_space<vmem>>, %arg5: memref<256x256xbf16, #tpu.memory_space<vmem>>, %arg6: memref<1x256xf32, #tpu.memory_space<vmem>>, %arg7: memref<256x128xbf16, #tpu.memory_space<vmem>>, %arg8: memref<1x128xf32, #tpu.memory_space<vmem>>, %arg9: memref<8x128xf32, #tpu.memory_space<vmem>>) attributes {dimension_semantics = [], scalar_prefetch = 0 : i64, scratch_operands = 0 : i64, tpu.core_type = #tpu.core_type<tc>} {
    %c0 = arith.constant 0 : index
    %c0_0 = arith.constant 0 : index
    %0 = vector.load %arg0[%c0, %c0_0] : memref<8x128xf32, #tpu.memory_space<vmem>>, vector<8x128xf32>
    %1 = arith.truncf %0 : vector<8x128xf32> to vector<8x128xbf16>
    %c0_1 = arith.constant 0 : index
    %c0_2 = arith.constant 0 : index
    %2 = vector.load %arg1[%c0_1, %c0_2] : memref<128x256xbf16, #tpu.memory_space<vmem>>, vector<128x256xbf16>
    %cst = arith.constant dense<0.000000e+00> : vector<8x256xf32>
    %3 = tpu.matmul %1, %2, %cst {dimension_numbers = #tpu.dot_dimension_numbers<[1], [0], [0], [1], [0, 0, 1, 1], [], []>} : vector<8x128xbf16>, vector<128x256xbf16>, vector<8x256xf32> -> vector<8x256xf32>
    %c0_3 = arith.constant 0 : index
    %c0_4 = arith.constant 0 : index
    %4 = vector.load %arg2[%c0_3, %c0_4] : memref<1x256xf32, #tpu.memory_space<vmem>>, vector<1x256xf32>
    %5 = vector.broadcast %4 : vector<1x256xf32> to vector<8x256xf32>
    %6 = arith.addf %3, %5 : vector<8x256xf32>
    %cst_5 = arith.constant 0.000000e+00 : f32
    %7 = vector.broadcast %cst_5 : f32 to vector<8x256xf32>
    %8 = arith.maximumf %6, %7 : vector<8x256xf32>
    %9 = arith.truncf %8 : vector<8x256xf32> to vector<8x256xbf16>
    %c0_6 = arith.constant 0 : index
    %c0_7 = arith.constant 0 : index
    %10 = vector.load %arg3[%c0_6, %c0_7] : memref<256x256xbf16, #tpu.memory_space<vmem>>, vector<256x256xbf16>
    %cst_8 = arith.constant dense<0.000000e+00> : vector<8x256xf32>
    %11 = tpu.matmul %9, %10, %cst_8 {dimension_numbers = #tpu.dot_dimension_numbers<[1], [0], [0], [1], [0, 0, 1, 1], [], []>} : vector<8x256xbf16>, vector<256x256xbf16>, vector<8x256xf32> -> vector<8x256xf32>
    %c0_9 = arith.constant 0 : index
    %c0_10 = arith.constant 0 : index
    %12 = vector.load %arg4[%c0_9, %c0_10] : memref<1x256xf32, #tpu.memory_space<vmem>>, vector<1x256xf32>
    %13 = vector.broadcast %12 : vector<1x256xf32> to vector<8x256xf32>
    %14 = arith.addf %11, %13 : vector<8x256xf32>
    %cst_11 = arith.constant 0.000000e+00 : f32
    %15 = vector.broadcast %cst_11 : f32 to vector<8x256xf32>
    %16 = arith.maximumf %14, %15 : vector<8x256xf32>
    %17 = arith.truncf %16 : vector<8x256xf32> to vector<8x256xbf16>
    %c0_12 = arith.constant 0 : index
    %c0_13 = arith.constant 0 : index
    %18 = vector.load %arg5[%c0_12, %c0_13] : memref<256x256xbf16, #tpu.memory_space<vmem>>, vector<256x256xbf16>
    %cst_14 = arith.constant dense<0.000000e+00> : vector<8x256xf32>
    %19 = tpu.matmul %17, %18, %cst_14 {dimension_numbers = #tpu.dot_dimension_numbers<[1], [0], [0], [1], [0, 0, 1, 1], [], []>} : vector<8x256xbf16>, vector<256x256xbf16>, vector<8x256xf32> -> vector<8x256xf32>
    %c0_15 = arith.constant 0 : index
    %c0_16 = arith.constant 0 : index
    %20 = vector.load %arg6[%c0_15, %c0_16] : memref<1x256xf32, #tpu.memory_space<vmem>>, vector<1x256xf32>
    %21 = vector.broadcast %20 : vector<1x256xf32> to vector<8x256xf32>
    %22 = arith.addf %19, %21 : vector<8x256xf32>
    %23 = arith.addf %22, %8 : vector<8x256xf32>
    %cst_17 = arith.constant 0.000000e+00 : f32
    %24 = vector.broadcast %cst_17 : f32 to vector<8x256xf32>
    %25 = arith.maximumf %23, %24 : vector<8x256xf32>
    %26 = arith.truncf %25 : vector<8x256xf32> to vector<8x256xbf16>
    %c0_18 = arith.constant 0 : index
    %c0_19 = arith.constant 0 : index
    %27 = vector.load %arg7[%c0_18, %c0_19] : memref<256x128xbf16, #tpu.memory_space<vmem>>, vector<256x128xbf16>
    %cst_20 = arith.constant dense<0.000000e+00> : vector<8x128xf32>
    %28 = tpu.matmul %26, %27, %cst_20 {dimension_numbers = #tpu.dot_dimension_numbers<[1], [0], [0], [1], [0, 0, 1, 1], [], []>} : vector<8x256xbf16>, vector<256x128xbf16>, vector<8x128xf32> -> vector<8x128xf32>
    %c0_21 = arith.constant 0 : index
    %c0_22 = arith.constant 0 : index
    %29 = vector.load %arg8[%c0_21, %c0_22] : memref<1x128xf32, #tpu.memory_space<vmem>>, vector<1x128xf32>
    %30 = vector.broadcast %29 : vector<1x128xf32> to vector<8x128xf32>
    %31 = arith.addf %28, %30 : vector<8x128xf32>
    %32 = tpu.iota {dimensions = array<i32: 1>} : vector<8x128xi32>
    %c2_i32 = arith.constant 2 : i32
    %33 = vector.broadcast %c2_i32 : i32 to vector<8x128xi32>
    %34 = arith.cmpi sge, %32, %33 : vector<8x128xi32>
    %c4_i32 = arith.constant 4 : i32
    %35 = vector.broadcast %c4_i32 : i32 to vector<8x128xi32>
    %36 = arith.cmpi slt, %32, %35 : vector<8x128xi32>
    %37 = arith.andi %34, %36 : vector<8x128xi1>
    %cst_23 = arith.constant -2.000000e+01 : f32
    %cst_24 = arith.constant 2.000000e+00 : f32
    %38 = vector.broadcast %cst_23 : f32 to vector<8x128xf32>
    %39 = arith.maximumf %38, %31 : vector<8x128xf32>
    %40 = vector.broadcast %cst_24 : f32 to vector<8x128xf32>
    %41 = arith.minimumf %40, %39 : vector<8x128xf32>
    %42 = arith.select %37, %41, %31 : vector<8x128xi1>, vector<8x128xf32>
    %c0_25 = arith.constant 0 : index
    %c0_26 = arith.constant 0 : index
    %43 = vector.load %arg9[%c0_25, %c0_26] : memref<8x128xf32, #tpu.memory_space<vmem>>, vector<8x128xf32>
    tpu.vector_store %arg9[%c0_25, %c0_26], %42 {strides = array<i32>} : memref<8x128xf32, #tpu.memory_space<vmem>>, vector<8x128xf32>,
    return
  }
}

</mosaic_0001>

<bundles_post_ra>
// kernel: tpu_custom_call.1
= control target key start
LH: loop header
LB: loop body
LE: loop exit
PB: predicated region body
PF: predicated region fallthrough
CT: control target
= control target key end

     0   :  { %14 = vsyncpa [#allocation3], 0  ;;  %s1538_s0 = inlined_call_operand.hbm [shape: f32[8,128], index: 0, kind: input, shape index: {}]   ;;  %s1539_s1 = inlined_call_operand.hbm [shape: bf16[128,256], index: 1, kind: input, shape index: {}]   ;;  %s1540_s2 = inlined_call_operand.vmem [shape: f32[1,256], index: 2, kind: input, shape index: {}]   ;;  %s1541_s3 = inlined_call_operand.hbm [shape: bf16[256,256], index: 3, kind: input, shape index: {}]   ;;  %s1542_s4 = inlined_call_operand.vmem [shape: f32[1,256], index: 4, kind: input, shape index: {}]   ;;  %s1543_s5 = inlined_call_operand.hbm [shape: bf16[256,256], index: 5, kind: input, shape index: {}]   ;;  %s1544_s6 = inlined_call_operand.vmem [shape: f32[1,256], index: 6, kind: input, shape index: {}]   ;;  %s1545_s7 = inlined_call_operand.hbm [shape: bf16[256,128], index: 7, kind: input, shape index: {}]   ;;  %s1546_s8 = inlined_call_operand.vmem [shape: f32[1,128], index: 8, kind: input, shape index: {}]   ;;  %s1547_s9 = inlined_call_operand.hbm [shape: f32[8,128], index: 9, kind: output, shape index: {}]  }
   0x1   :  { %15 = vsyncpa [#allocation6], 0 }
   0x2   :  { %16 = vsyncpa [#allocation9], 0 }
   0x3   :  { %17 = vsyncpa [#allocation4], 0  ;;  %s1362_s30 = smov [#allocation5]   ;;  %s1222_s13 = scalar_lea.hbm %s1539_s1, 2048 }
   0x4   :  { %s33_s10 = sshll.u32 %s1362_s30, 4  ;;  %p1223_p0 = scmp.ne.s32.totalorder %s1539_s1, %s1222_s13  ;;  %s34_s10 = int_to_ptr.vmem [resolvable:$true] %s33_s10 }
   0x5   :  { %p1226_p1 = scmp.lt.u32.totalorder %s1222_s13, %s1539_s1 }
   0x7   :  { %p1228_p2 = pnand %p1226_p1, %p1223_p0 }
   0x9   :  { %1231 = shalt.err (!%p1228_p2)
}
   0xa   :  { %s1232_s18 = scalar_lea.vmem %s34_s10, 2048  ;;  %p1237_p4 = scmp.lt.s32.totalorder %s34_s10, %s34_s10 }
   0xb   :  { %p1233_p3 = scmp.ne.s32.totalorder %s34_s10, %s1232_s18  ;;  %p1238_p5 = scmp.lt.s32.totalorder %s1232_s18, %s1232_s18 }
   0xd   :  { %p1239_p6 = por %p1238_p5, %p1237_p4 }
   0xf   :  { %p1240_p7 = pnand %p1239_p6, %p1233_p3 }
  0x11   :  { %1243 = shalt.err (!%p1240_p7)
}
  0x12   :  { %s1363_s19 = smov 128   ;;  %s1364_s20 = smov 8  }
  0x13   :  { %39 = dma.hbm_to_vmem [thread:$0]  %s1539_s1, 2048, %s34_s10, [#allocation6], %s1363_s19, %s1363_s19, %s1364_s20  }
  0x14   :  { %s1365_s23 = smov [#allocation8]   ;;  %s1366_s25 = smov [#allocation2]  }
  0x15   :  { %s61_s24 = sshll.u32 %s1365_s23, 4  ;;  %s24_s26 = sshll.u32 %s1366_s25, 4  ;;  %s62_s24 = int_to_ptr.vmem [resolvable:$true] %s61_s24  ;;  %s25_s26 = int_to_ptr.vmem [resolvable:$true] %s24_s26 }
  0x16   :  { %s1244_s29 = scalar_lea.hbm %s1543_s5, 4096 }
  0x17   :  { %p1245_p8 = scmp.ne.s32.totalorder %s1543_s5, %s1244_s29  ;;  %p1248_p9 = scmp.lt.u32.totalorder %s1244_s29, %s1543_s5 }
  0x19   :  { %p1250_p10 = pnand %p1248_p9, %p1245_p8 }
  0x1b   :  { %1253 = shalt.err (!%p1250_p10)
}
  0x1c   :  { %s1254_s1 = scalar_lea.vmem %s62_s24, 4096  ;;  %p1259_p12 = scmp.lt.s32.totalorder %s62_s24, %s62_s24 }
  0x1d   :  { %p1255_p11 = scmp.ne.s32.totalorder %s62_s24, %s1254_s1  ;;  %p1260_p13 = scmp.lt.s32.totalorder %s1254_s1, %s1254_s1 }
  0x1f   :  { %p1261_p0 = por %p1260_p13, %p1259_p12 }
  0x21   :  { %p1262_p1 = pnand %p1261_p0, %p1255_p11 }
  0x23   :  { %1265 = shalt.err (!%p1262_p1)
}
  0x24   :  { %67 = dma.hbm_to_vmem [thread:$0]  %s1543_s5, 4096, %s62_s24, [#allocation9], %s1363_s19, %s1363_s19, %s1364_s20  }
  0x25   :  { %s1266_s17 = scalar_lea.hbm %s1538_s0, 128 }
  0x26   :  { %p1267_p2 = scmp.ne.s32.totalorder %s1538_s0, %s1266_s17  ;;  %p1270_p3 = scmp.lt.u32.totalorder %s1266_s17, %s1538_s0 }
  0x28   :  { %p1272_p4 = pnand %p1270_p3, %p1267_p2 }
  0x2a   :  { %1275 = shalt.err (!%p1272_p4)
}
  0x2b   :  { %s1276_s25 = scalar_lea.vmem %s25_s26, 128  ;;  %p1281_p6 = scmp.lt.s32.totalorder %s25_s26, %s25_s26 }
  0x2c   :  { %p1277_p5 = scmp.ne.s32.totalorder %s25_s26, %s1276_s25  ;;  %p1282_p7 = scmp.lt.s32.totalorder %s1276_s25, %s1276_s25 }
  0x2e   :  { %p1283_p8 = por %p1282_p7, %p1281_p6 }
  0x30   :  { %p1284_p9 = pnand %p1283_p8, %p1277_p5 }
  0x32   :  { %1287 = shalt.err (!%p1284_p9)
}
  0x33   :  { %27 = dma.hbm_to_vmem [thread:$0]  %s1538_s0, 128, %s25_s26, [#allocation3]  }
  0x34   :  { %s1367_s27 = smov [#allocation7]   ;;  %s1368_s29 = smov [#allocation10]  }
  0x35   :  { %s47_s28 = sshll.u32 %s1367_s27, 4  ;;  %s75_s30 = sshll.u32 %s1368_s29, 4  ;;  %s48_s28 = int_to_ptr.vmem [resolvable:$true] %s47_s28  ;;  %s76_s30 = int_to_ptr.vmem [resolvable:$true] %s75_s30 }
  0x36   :  { %s1288_s13 = scalar_lea.hbm %s1541_s3, 4096 }
  0x37   :  { %p1289_p10 = scmp.ne.s32.totalorder %s1541_s3, %s1288_s13  ;;  %p1292_p11 = scmp.lt.u32.totalorder %s1288_s13, %s1541_s3 }
  0x39   :  { %p1294_p12 = pnand %p1292_p11, %p1289_p10 }
  0x3b   :  { %1297 = shalt.err (!%p1294_p12)
}
  0x3c   :  { %s1298_s0 = scalar_lea.vmem %s48_s28, 4096  ;;  %p1303_p0 = scmp.lt.s32.totalorder %s48_s28, %s48_s28 }
  0x3d   :  { %p1299_p13 = scmp.ne.s32.totalorder %s48_s28, %s1298_s0  ;;  %p1304_p1 = scmp.lt.s32.totalorder %s1298_s0, %s1298_s0 }
  0x3f   :  { %p1305_p2 = por %p1304_p1, %p1303_p0 }
  0x41   :  { %p1306_p3 = pnand %p1305_p2, %p1299_p13 }
  0x43   :  { %1309 = shalt.err (!%p1306_p3)
}
  0x44   :  { %53 = dma.hbm_to_vmem [thread:$0]  %s1541_s3, 4096, %s48_s28, [#allocation6], %s1363_s19, %s1363_s19, %s1364_s20  }
  0x45   :  { %s1310_s21 = scalar_lea.hbm %s1545_s7, 2048 }
  0x46   :  { %p1311_p4 = scmp.ne.s32.totalorder %s1545_s7, %s1310_s21  ;;  %p1314_p5 = scmp.lt.u32.totalorder %s1310_s21, %s1545_s7 }
  0x48   :  { %p1316_p6 = pnand %p1314_p5, %p1311_p4 }
  0x4a   :  { %1319 = shalt.err (!%p1316_p6)
}
  0x4b   :  { %s1320_s24 = scalar_lea.vmem %s76_s30, 2048  ;;  %p1325_p8 = scmp.lt.s32.totalorder %s76_s30, %s76_s30 }
  0x4c   :  { %p1321_p7 = scmp.ne.s32.totalorder %s76_s30, %s1320_s24  ;;  %p1326_p9 = scmp.lt.s32.totalorder %s1320_s24, %s1320_s24 }
  0x4e   :  { %p1327_p10 = por %p1326_p9, %p1325_p8 }
  0x50   :  { %p1328_p11 = pnand %p1327_p10, %p1321_p7 }
  0x52   :  { %1331 = shalt.err (!%p1328_p11)
}
  0x53   :  { %s1369_s3 = smov 64   ;;  %s1370_s19 = smov 4  }
  0x54   :  { %81 = dma.hbm_to_vmem [thread:$0]  %s1545_s7, 2048, %s76_s30, [#allocation9], %s1369_s3, %s1369_s3, %s1370_s19  }
  0x55   :  { %1354 = dma.done.wait [#allocation3], 128  }
  0x56   :  { %1355 = vsyncadd [#allocation3], 4294967168 }
  0x57   :  { %1356 = dma.done.wait [#allocation6], 6144  }
  0x58   :  { %1357 = vsyncadd [#allocation6], 4294961152 }
  0x59   :  { %1358 = dma.done.wait [#allocation9], 6144  }
  0x5a   :  { %1359 = vsyncadd [#allocation9], 4294961152  ;;  %v1371_v0 = vmov 0   ;;  %v1086_v1 = vld [vmem:[#allocation5 + $0x4] ss:$8 sps:$4 sm:$0xff]   ;;  %v100_v26 = vld [vmem:[#allocation2] sm:$0xff] }
  0x5b   :  { %242 = vmatprep.mubr.bf16.mxu0 %v1371_v0  ;;  %v1088_v2 = vld [vmem:[#allocation5] ss:$8 sps:$4 sm:$0xff]   ;;  %210 = vmatprep.subr.bf16.mxu0 %v1086_v1  ;;  %v1089_v3 = vld [vmem:[#allocation5 + $0x14] ss:$8 sps:$4 sm:$0xff]   ;;  %v1091_v4 = vld [vmem:[#allocation5 + $0x10] ss:$8 sps:$4 sm:$0xff]   ;;  %v101_v31 = vpack.c.bf16 %v100_v26, %v100_v26 }
  0x5c   :  { %211 = vmatpush1.bf16.msra.mxu0 %v1088_v2  ;;  %v1092_v5 = vld [vmem:[#allocation5 + $0x24] ss:$8 sps:$4 sm:$0xff]   ;;  %v1094_v6 = vld [vmem:[#allocation5 + $0x20] ss:$8 sps:$4 sm:$0xff]   ;;  %v1095_v7 = vld [vmem:[#allocation5 + $0x34] ss:$8 sps:$4 sm:$0xff]  }
  0x5d   :  { %212 = vmatprep.subr.bf16.mxu0 %v1089_v3  ;;  %v1097_v8 = vld [vmem:[#allocation5 + $0x30] ss:$8 sps:$4 sm:$0xff]   ;;  %v1098_v9 = vld [vmem:[#allocation5 + $0x44] ss:$8 sps:$4 sm:$0xff]   ;;  %v1112_v11 = vld [vmem:[#allocation7] ss:$8 sps:$4 sm:$0xff]  }
  0x5e   :  { %v1110_v10 = vld [vmem:[#allocation7 + $0x4] ss:$8 sps:$4 sm:$0xff]   ;;  %v1113_v12 = vld [vmem:[#allocation7 + $0x14] ss:$8 sps:$4 sm:$0xff]   ;;  %v1100_v13 = vld [vmem:[#allocation5 + $0x40] ss:$8 sps:$4 sm:$0xff]  }
  0x5f   :  { %459 = vmatprep.subr.bf16.mxu1 %v1110_v10  ;;  %v1115_v14 = vld [vmem:[#allocation7 + $0x10] ss:$8 sps:$4 sm:$0xff]   ;;  %v1116_v15 = vld [vmem:[#allocation7 + $0x24] ss:$8 sps:$4 sm:$0xff]   ;;  %v1101_v16 = vld [vmem:[#allocation5 + $0x54] ss:$8 sps:$4 sm:$0xff]  }
  0x60   :  { %213 = vmatpush1.bf16.msra.mxu0 %v1091_v4  ;;  %460 = vmatpush1.bf16.msra.mxu1 %v1112_v11  ;;  %v1103_v17 = vld [vmem:[#allocation5 + $0x50] ss:$8 sps:$4 sm:$0xff]   ;;  %v1118_v18 = vld [vmem:[#allocation7 + $0x20] ss:$8 sps:$4 sm:$0xff]   ;;  %v1119_v19 = vld [vmem:[#allocation7 + $0x34] ss:$8 sps:$4 sm:$0xff]  }
  0x61   :  { %214 = vmatprep.subr.bf16.mxu0 %v1092_v5  ;;  %461 = vmatprep.subr.bf16.mxu1 %v1113_v12  ;;  %v1104_v20 = vld [vmem:[#allocation5 + $0x64] ss:$8 sps:$4 sm:$0xff]   ;;  %v1106_v21 = vld [vmem:[#allocation5 + $0x60] ss:$8 sps:$4 sm:$0xff]   ;;  %v1121_v22 = vld [vmem:[#allocation7 + $0x30] ss:$8 sps:$4 sm:$0xff]  }
  0x62   :  { %v1122_v23 = vld [vmem:[#allocation7 + $0x44] ss:$8 sps:$4 sm:$0xff]   ;;  %v1107_v24 = vld [vmem:[#allocation5 + $0x74] ss:$8 sps:$4 sm:$0xff]   ;;  %v1109_v25 = vld [vmem:[#allocation5 + $0x70] ss:$8 sps:$4 sm:$0xff]  }
  0x63   :  { %v1124_v27 = vld [vmem:[#allocation7 + $0x40] ss:$8 sps:$4 sm:$0xff]   ;;  %v1125_v28 = vld [vmem:[#allocation7 + $0x54] ss:$8 sps:$4 sm:$0xff]   ;;  %v1127_v29 = vld [vmem:[#allocation7 + $0x50] ss:$8 sps:$4 sm:$0xff]  }
  0x64   :  { %215 = vmatpush1.bf16.msra.mxu0 %v1094_v6  ;;  %462 = vmatpush1.bf16.msra.mxu1 %v1115_v14  ;;  %v1128_v30 = vld [vmem:[#allocation7 + $0x64] ss:$8 sps:$4 sm:$0xff]   ;;  %v1130_v32 = vld [vmem:[#allocation7 + $0x60] ss:$8 sps:$4 sm:$0xff]   ;;  %v1131_v33 = vld [vmem:[#allocation7 + $0x74] ss:$8 sps:$4 sm:$0xff]  }
  0x65   :  { %216 = vmatprep.subr.bf16.mxu0 %v1095_v7  ;;  %463 = vmatprep.subr.bf16.mxu1 %v1116_v15  ;;  %v1133_v34 = vld [vmem:[#allocation7 + $0x70] ss:$8 sps:$4 sm:$0xff]   ;;  %v1134_v35 = vld [vmem:[#allocation7 + $0x84] ss:$8 sps:$4 sm:$0xff]   ;;  %v1136_v36 = vld [vmem:[#allocation7 + $0x80] ss:$8 sps:$4 sm:$0xff]   ;;  %v120_v15 = vlaneseq }
  0x66   :  { %v1137_v37 = vld [vmem:[#allocation7 + $0x94] ss:$8 sps:$4 sm:$0xff]   ;;  %v1139_v38 = vld [vmem:[#allocation7 + $0x90] ss:$8 sps:$4 sm:$0xff]   ;;  %v1140_v39 = vld [vmem:[#allocation7 + $0xa4] ss:$8 sps:$4 sm:$0xff]  }
  0x67   :  { %v1142_v40 = vld [vmem:[#allocation7 + $0xa0] ss:$8 sps:$4 sm:$0xff]   ;;  %v1143_v41 = vld [vmem:[#allocation7 + $0xb4] ss:$8 sps:$4 sm:$0xff]   ;;  %v1145_v42 = vld [vmem:[#allocation7 + $0xb0] ss:$8 sps:$4 sm:$0xff]  }
  0x68   :  { %217 = vmatpush1.bf16.msra.mxu0 %v1097_v8  ;;  %464 = vmatpush1.bf16.msra.mxu1 %v1118_v18  ;;  %v1146_v43 = vld [vmem:[#allocation7 + $0xc4] ss:$8 sps:$4 sm:$0xff]   ;;  %v1148_v44 = vld [vmem:[#allocation7 + $0xc0] ss:$8 sps:$4 sm:$0xff]   ;;  %v1149_v45 = vld [vmem:[#allocation7 + $0xd4] ss:$8 sps:$4 sm:$0xff]  }
  0x69   :  { %218 = vmatprep.subr.bf16.mxu0 %v1098_v9  ;;  %465 = vmatprep.subr.bf16.mxu1 %v1119_v19  ;;  %v1151_v46 = vld [vmem:[#allocation7 + $0xd0] ss:$8 sps:$4 sm:$0xff]   ;;  %v1152_v47 = vld [vmem:[#allocation7 + $0xe4] ss:$8 sps:$4 sm:$0xff]   ;;  %v1154_v48 = vld [vmem:[#allocation7 + $0xe0] ss:$8 sps:$4 sm:$0xff]  }
  0x6a   :  { %v1155_v49 = vld [vmem:[#allocation7 + $0xf4] ss:$8 sps:$4 sm:$0xff]   ;;  %v1157_v50 = vld [vmem:[#allocation7 + $0xf0] ss:$8 sps:$4 sm:$0xff]   ;;  %v1158_v51 = vld [vmem:[#allocation8] ss:$8 sps:$4 sm:$0xff]  }
  0x6b   :  { %v1160_v52 = vld [vmem:[#allocation8 + $0x4] ss:$8 sps:$4 sm:$0xff]   ;;  %v1163_v53 = vld [vmem:[#allocation8 + $0x14] ss:$8 sps:$4 sm:$0xff]   ;;  %v1161_v54 = vld [vmem:[#allocation8 + $0x10] ss:$8 sps:$4 sm:$0xff]  }
  0x6c   :  { %219 = vmatpush1.bf16.msra.mxu0 %v1100_v13  ;;  %466 = vmatpush1.bf16.msra.mxu1 %v1121_v22  ;;  %v1166_v55 = vld [vmem:[#allocation8 + $0x24] ss:$8 sps:$4 sm:$0xff]   ;;  %v1164_v56 = vld [vmem:[#allocation8 + $0x20] ss:$8 sps:$4 sm:$0xff]   ;;  %v1169_v57 = vld [vmem:[#allocation8 + $0x34] ss:$8 sps:$4 sm:$0xff]  }
  0x6d   :  { %220 = vmatprep.subr.bf16.mxu0 %v1101_v16  ;;  %467 = vmatprep.subr.bf16.mxu1 %v1122_v23  ;;  %v1167_v58 = vld [vmem:[#allocation8 + $0x30] ss:$8 sps:$4 sm:$0xff]   ;;  %v1172_v59 = vld [vmem:[#allocation8 + $0x44] ss:$8 sps:$4 sm:$0xff]   ;;  %v1170_v60 = vld [vmem:[#allocation8 + $0x40] ss:$8 sps:$4 sm:$0xff]  }
  0x6e   :  { %v1175_v61 = vld [vmem:[#allocation8 + $0x54] ss:$8 sps:$4 sm:$0xff]   ;;  %v1173_v62 = vld [vmem:[#allocation8 + $0x50] ss:$8 sps:$4 sm:$0xff]   ;;  %v1178_v63 = vld [vmem:[#allocation8 + $0x64] ss:$8 sps:$4 sm:$0xff]  }
  0x6f   :  { %v1176_v0 = vld [vmem:[#allocation8 + $0x60] ss:$8 sps:$4 sm:$0xff]   ;;  %v1181_v1 = vld [vmem:[#allocation8 + $0x74] ss:$8 sps:$4 sm:$0xff]   ;;  %v1179_v2 = vld [vmem:[#allocation8 + $0x70] ss:$8 sps:$4 sm:$0xff]  }
  0x70   :  { %221 = vmatpush1.bf16.msra.mxu0 %v1103_v17  ;;  %468 = vmatpush1.bf16.msra.mxu1 %v1124_v27  ;;  %v1184_v3 = vld [vmem:[#allocation8 + $0x84] ss:$8 sps:$4 sm:$0xff]   ;;  %v1182_v4 = vld [vmem:[#allocation8 + $0x80] ss:$8 sps:$4 sm:$0xff]   ;;  %v1187_v5 = vld [vmem:[#allocation8 + $0x94] ss:$8 sps:$4 sm:$0xff]  }
  0x71   :  { %222 = vmatprep.subr.bf16.mxu0 %v1104_v20  ;;  %469 = vmatprep.subr.bf16.mxu1 %v1125_v28  ;;  %v1185_v6 = vld [vmem:[#allocation8 + $0x90] ss:$8 sps:$4 sm:$0xff]   ;;  %v1190_v7 = vld [vmem:[#allocation8 + $0xa4] ss:$8 sps:$4 sm:$0xff]   ;;  %v1188_v8 = vld [vmem:[#allocation8 + $0xa0] ss:$8 sps:$4 sm:$0xff]  }
  0x72   :  { %v1193_v9 = vld [vmem:[#allocation8 + $0xb4] ss:$8 sps:$4 sm:$0xff]   ;;  %v1191_v10 = vld [vmem:[#allocation8 + $0xb0] ss:$8 sps:$4 sm:$0xff]   ;;  %v1196_v11 = vld [vmem:[#allocation8 + $0xc4] ss:$8 sps:$4 sm:$0xff]  }
  0x73   :  { %v1194_v12 = vld [vmem:[#allocation8 + $0xc0] ss:$8 sps:$4 sm:$0xff]   ;;  %v1199_v13 = vld [vmem:[#allocation8 + $0xd4] ss:$8 sps:$4 sm:$0xff]   ;;  %v1197_v14 = vld [vmem:[#allocation8 + $0xd0] ss:$8 sps:$4 sm:$0xff]  }
  0x74   :  { %223 = vmatpush1.bf16.msra.mxu0 %v1106_v21  ;;  %470 = vmatpush1.bf16.msra.mxu1 %v1127_v29  ;;  %v121_v16 = vshrl.u32 %v120_v15, 7  ;;  %v118_v18 = vld [vmem:[%s1540_s2] sm:$0x3]  ;;  %s1372_s12 = smov [#allocation11]  }
  0x75   :  { %224 = vmatprep.subr.bf16.mxu0 %v1107_v24  ;;  %471 = vmatprep.subr.bf16.mxu1 %v1128_v30  ;;  %s945_s13 = sshll.u32 %s1372_s12, 4  ;;  %s946_s13 = int_to_ptr.vmem [resolvable:$true] %s945_s13 }
  0x76   :  { %v1493_v17 = vsub.s32 0, %v121_v16  ;;  %v1498_v19 = vsub.s32 1, %v121_v16  ;;  %s1332_s1 = scalar_lea.vmem %s946_s13, 128  ;;  %p1337_p13 = scmp.lt.s32.totalorder %s946_s13, %s946_s13 }
  0x77   :  { %p1333_p12 = scmp.ne.s32.totalorder %s946_s13, %s1332_s1  ;;  %p1338_p0 = scmp.lt.s32.totalorder %s1332_s1, %s1332_s1 }
  0x78   :  { %225 = vmatpush1.bf16.msra.mxu0 %v1109_v25  ;;  %472 = vmatpush1.bf16.msra.mxu1 %v1130_v32  ;;  %v123_v20 = vrot.slane %v118_v18, %v1493_v17  ;;  %v127_v21 = vrot.slane %v118_v18, %v1498_v19  ;;  %v1202_v32 = vld [vmem:[#allocation8 + $0xe4] ss:$8 sps:$4 sm:$0xff]  }
  0x79   :  { %473 = vmatprep.subr.bf16.mxu1 %v1131_v33  ;;  %708 = vmatprep.subr.bf16.mxu0 %v1160_v52  ;;  %v1200_v33 = vld [vmem:[#allocation8 + $0xe0] ss:$8 sps:$4 sm:$0xff]   ;;  %p1339_p1 = por %p1338_p0, %p1337_p13 }
  0x7b   :  { %243 = vmatmul.mubr.bf16.vlgmr.msra.gmra.mrb[0].mxu0 %v101_v31  ;;  %p1340_p2 = pnand %p1339_p1, %p1333_p12 }
  0x7c   :  { %474 = vmatpush1.bf16.msra.mxu1 %v1133_v34  ;;  %709 = vmatpush1.bf16.msra.mxu0 %v1158_v51  ;;  %v1205_v34 = vld [vmem:[#allocation8 + $0xf4] ss:$8 sps:$4 sm:$0xff]  }
  0x7d   :  { %475 = vmatprep.subr.bf16.mxu1 %v1134_v35  ;;  %710 = vmatprep.subr.bf16.mxu0 %v1163_v53  ;;  %v1203_v35 = vld [vmem:[#allocation8 + $0xf0] ss:$8 sps:$4 sm:$0xff]  }
  0x80   :  { %476 = vmatpush1.bf16.msra.mxu1 %v1136_v36  ;;  %711 = vmatpush1.bf16.msra.mxu0 %v1161_v54  ;;  %v1206_v36 = vld [vmem:[#allocation10 + $0x40] sm:$0xff]  }
  0x81   :  { %477 = vmatprep.subr.bf16.mxu1 %v1137_v37  ;;  %712 = vmatprep.subr.bf16.mxu0 %v1166_v55  ;;  %v1207_v37 = vld [vmem:[#allocation10] sm:$0xff]  }
  0x84   :  { %478 = vmatpush1.bf16.msra.mxu1 %v1139_v38  ;;  %713 = vmatpush1.bf16.msra.mxu0 %v1164_v56  ;;  %v1208_v38 = vld [vmem:[#allocation10 + $0x48] sm:$0xff]  }
  0x85   :  { %479 = vmatprep.subr.bf16.mxu1 %v1140_v39  ;;  %714 = vmatprep.subr.bf16.mxu0 %v1169_v57  ;;  %v1209_v39 = vld [vmem:[#allocation10 + $0x8] sm:$0xff]  }
  0x88   :  { %480 = vmatpush1.bf16.msra.mxu1 %v1142_v40  ;;  %715 = vmatpush1.bf16.msra.mxu0 %v1167_v58  ;;  %v1210_v40 = vld [vmem:[#allocation10 + $0x50] sm:$0xff]  }
  0x89   :  { %481 = vmatprep.subr.bf16.mxu1 %v1143_v41  ;;  %716 = vmatprep.subr.bf16.mxu0 %v1172_v59  ;;  %v1211_v41 = vld [vmem:[#allocation10 + $0x10] sm:$0xff]  }
  0x8c   :  { %482 = vmatpush1.bf16.msra.mxu1 %v1145_v42  ;;  %717 = vmatpush1.bf16.msra.mxu0 %v1170_v60  ;;  %v1212_v42 = vld [vmem:[#allocation10 + $0x58] sm:$0xff]   ;;  %v1217_v60 = vld [vmem:[#allocation10 + $0x28] sm:$0xff]  }
  0x8d   :  { %483 = vmatprep.subr.bf16.mxu1 %v1146_v43  ;;  %718 = vmatprep.subr.bf16.mxu0 %v1175_v61  ;;  %v1213_v43 = vld [vmem:[#allocation10 + $0x18] sm:$0xff]   ;;  %v1218_v61 = vld [vmem:[#allocation10 + $0x70] sm:$0xff]  }
  0x90   :  { %484 = vmatpush1.bf16.msra.mxu1 %v1148_v44  ;;  %719 = vmatpush1.bf16.msra.mxu0 %v1173_v62  ;;  %v1214_v44 = vld [vmem:[#allocation10 + $0x60] sm:$0xff]   ;;  %v1219_v62 = vld [vmem:[#allocation10 + $0x30] sm:$0xff]  }
  0x91   :  { %485 = vmatprep.subr.bf16.mxu1 %v1149_v45  ;;  %720 = vmatprep.subr.bf16.mxu0 %v1178_v63  ;;  %v1215_v45 = vld [vmem:[#allocation10 + $0x20] sm:$0xff]   ;;  %v1220_v63 = vld [vmem:[#allocation10 + $0x78] sm:$0xff]  }
  0x94   :  { %486 = vmatpush1.bf16.msra.mxu1 %v1151_v46  ;;  %721 = vmatpush1.bf16.msra.mxu0 %v1176_v0  ;;  %v1216_v46 = vld [vmem:[#allocation10 + $0x68] sm:$0xff]   ;;  %v1221_v0 = vld [vmem:[#allocation10 + $0x38] sm:$0xff]  }
  0x95   :  { %487 = vmatprep.subr.bf16.mxu1 %v1152_v47  ;;  %722 = vmatprep.subr.bf16.mxu0 %v1181_v1  ;;  %v287_v47 = vld [vmem:[%s1542_s4] sm:$0x3] }
  0x96   :  { %v536_v1 = vld [vmem:[%s1544_s6] sm:$0x3] }
  0x98   :  { %488 = vmatpush1.bf16.msra.mxu1 %v1154_v48  ;;  %723 = vmatpush1.bf16.msra.mxu0 %v1179_v2  ;;  %v292_v48 = vrot.slane %v287_v47, %v1493_v17  ;;  %v541_v2 = vrot.slane %v536_v1, %v1493_v17  ;;  %v931_v17 = vand.u32 127, %v120_v15 }
  0x99   :  { %489 = vmatprep.subr.bf16.mxu1 %v1155_v49  ;;  %724 = vmatprep.subr.bf16.mxu0 %v1184_v3  ;;  %v296_v49 = vrot.slane %v287_v47, %v1498_v19  ;;  %v545_v3 = vrot.slane %v536_v1, %v1498_v19  ;;  %v1036_v19 = vld [vmem:[%s1546_s8] ss:$0 sm:$0xff] }
  0x9a   :  { %vm932_vm0 = vcmp.ge.s32.totalorder %v931_v17, 2  ;;  %vm933_vm1 = vcmp.lt.s32.totalorder %v931_v17, 4 }
  0x9b   :  { %vm934_vm2 = vmand %vm932_vm0, %vm933_vm1 }
  0x9c   :  { %490 = vmatpush1.bf16.msra.mxu1 %v1157_v50  ;;  %725 = vmatpush1.bf16.msra.mxu0 %v1182_v4 }
  0x9d   :  { %726 = vmatprep.subr.bf16.mxu0 %v1187_v5  ;;  %1053 = vmatprep.subr.bf16.mxu1 %v1206_v36 }
  0xa0   :  { %727 = vmatpush1.bf16.msra.mxu0 %v1185_v6 }
  0xa1   :  { %728 = vmatprep.subr.bf16.mxu0 %v1190_v7 }
  0xa4   :  { %729 = vmatpush1.bf16.msra.mxu0 %v1188_v8 }
  0xa5   :  { %730 = vmatprep.subr.bf16.mxu0 %v1193_v9 }
  0xa8   :  { %731 = vmatpush1.bf16.msra.mxu0 %v1191_v10 }
  0xa9   :  { %732 = vmatprep.subr.bf16.mxu0 %v1196_v11 }
  0xac   :  { %733 = vmatpush1.bf16.msra.mxu0 %v1194_v12 }
  0xad   :  { %734 = vmatprep.subr.bf16.mxu0 %v1199_v13 }
  0xb0   :  { %735 = vmatpush1.bf16.msra.mxu0 %v1197_v14 }
  0xb1   :  { %736 = vmatprep.subr.bf16.mxu0 %v1202_v32 }
  0xb4   :  { %737 = vmatpush1.bf16.msra.mxu0 %v1200_v33 }
  0xb5   :  { %738 = vmatprep.subr.bf16.mxu0 %v1205_v34 }
  0xb8   :  { %739 = vmatpush1.bf16.msra.mxu0 %v1203_v35 }
 0x14e   :  { %v244_v22 = vpop.f32.mrb[0].mxu0 }
 0x14f   :  { %v245_v23 = vadd.f32 %v244_v22, %v123_v20  ;;  %v246_v24 = vpop.f32.mrb[1].mxu0 }
 0x150   :  { %v247_v25 = vadd.f32 %v246_v24, %v127_v21  ;;  %v248_v26 = vpop.f32.mrb[2].mxu0 }
 0x151   :  { %v1502_v27 = vmax.f32 %v245_v23, 0.0  ;;  %v249_v28 = vpop.f32.mrb[3].mxu0 }
 0x152   :  { %v1504_v29 = vmax.f32 %v247_v25, 0.0 }
 0x153   :  { %v253_v31 = vpack.c.bf16 %v1502_v27, %v1502_v27 }
 0x154   :  { %v254_v30 = vpack.c.bf16 %v1504_v29, %v1504_v29 }
 0x156   :  { %491 = vmatprep.mubr.bf16.mxu1 %v254_v30 }
 0x157   :  { %492 = vmatmul.mubr.bf16.vlgmr.msra.gmra.mrb[0].mxu1 %v253_v31 }
 0x158   :  { %1054 = vmatpush3.bf16.msra.mxu1 %v1207_v37 }
 0x159   :  { %1055 = vmatprep.subr.bf16.mxu1 %v1208_v38 }
 0x15c   :  { %1056 = vmatpush3.bf16.msra.mxu1 %v1209_v39 }
 0x15d   :  { %1057 = vmatprep.subr.bf16.mxu1 %v1210_v40 }
 0x160   :  { %1058 = vmatpush3.bf16.msra.mxu1 %v1211_v41 }
 0x161   :  { %1059 = vmatprep.subr.bf16.mxu1 %v1212_v42 }
 0x164   :  { %1060 = vmatpush3.bf16.msra.mxu1 %v1213_v43 }
 0x165   :  { %1061 = vmatprep.subr.bf16.mxu1 %v1214_v44 }
 0x168   :  { %1062 = vmatpush3.bf16.msra.mxu1 %v1215_v45 }
 0x169   :  { %1063 = vmatprep.subr.bf16.mxu1 %v1216_v46 }
 0x16c   :  { %1064 = vmatpush3.bf16.msra.mxu1 %v1217_v60 }
 0x16d   :  { %1065 = vmatprep.subr.bf16.mxu1 %v1218_v61 }
 0x170   :  { %1066 = vmatpush3.bf16.msra.mxu1 %v1219_v62 }
 0x171   :  { %1067 = vmatprep.subr.bf16.mxu1 %v1220_v63 }
 0x174   :  { %1068 = vmatpush3.bf16.msra.mxu1 %v1221_v0 }
 0x22a   :  { %v493_v50 = vpop.f32.mrb[0].mxu1 }
 0x22b   :  { %v494_v51 = vadd.f32 %v493_v50, %v292_v48  ;;  %v495_v52 = vpop.f32.mrb[1].mxu1 }
 0x22c   :  { %v496_v53 = vadd.f32 %v495_v52, %v296_v49  ;;  %v497_v54 = vpop.f32.mrb[2].mxu1 }
 0x22d   :  { %v500_v55 = vmax.f32 %v494_v51, 0.0  ;;  %v498_v56 = vpop.f32.mrb[3].mxu1 }
 0x22e   :  { %v501_v57 = vmax.f32 %v496_v53, 0.0 }
 0x22f   :  { %v502_v59 = vpack.c.bf16 %v500_v55, %v500_v55 }
 0x230   :  { %v503_v58 = vpack.c.bf16 %v501_v57, %v501_v57 }
 0x232   :  { %740 = vmatprep.mubr.bf16.mxu0 %v503_v58 }
 0x233   :  { %741 = vmatmul.mubr.bf16.vlgmr.msra.gmra.mrb[4].mxu0 %v502_v59 }
 0x306   :  { %v742_v4 = vpop.f32.mrb[4].mxu0 }
 0x307   :  { %v743_v5 = vadd.f32 %v742_v4, %v541_v2  ;;  %v744_v6 = vpop.f32.mrb[5].mxu0 }
 0x308   :  { %v745_v7 = vadd.f32 %v744_v6, %v545_v3  ;;  %v746_v8 = vpop.f32.mrb[6].mxu0 }
 0x309   :  { %v749_v9 = vadd.f32 %v743_v5, %v1502_v27  ;;  %v747_v10 = vpop.f32.mrb[7].mxu0 }
 0x30a   :  { %v750_v11 = vadd.f32 %v745_v7, %v1504_v29 }
 0x30b   :  { %v751_v12 = vmax.f32 %v749_v9, 0.0 }
 0x30c   :  { %v752_v13 = vmax.f32 %v750_v11, 0.0 }
 0x30d   :  { %v753_v16 = vpack.c.bf16 %v751_v12, %v751_v12 }
 0x30e   :  { %v754_v14 = vpack.c.bf16 %v752_v13, %v752_v13 }
 0x310   :  { %922 = vmatprep.mubr.bf16.mxu1 %v754_v14 }
 0x311   :  { %923 = vmatmul.mubr.bf16.vlgmr.msra.gmra.mrb[4].mxu1 %v753_v16 }
 0x3e4   :  { %v1069_v18 = vpop.f32.mrb[4].mxu1 }
 0x3e5   :  { %v1070_v20 = vpop.f32.mrb[5].mxu1 }
 0x3e6   :  { %v1071_v21 = vadd.f32 %v1070_v20, %v1069_v18  ;;  %v1072_v22 = vpop.f32.mrb[6].mxu1 }
 0x3e7   :  { %v1073_v23 = vpop.f32.mrb[7].mxu1 }
 0x3e8   :  { %v925_v24 = vadd.f32 %v1071_v21, %v1036_v19 }
 0x3ea   :  { %v935_v25 = vmax.f32 %v925_v24, -20.0 }
 0x3ec   :  { %v936_v26 = vmin.f32 %v935_v25, 2.0 }
 0x3ee   :  { %v937_v27 = vsel %vm934_vm2, %v936_v26, %v925_v24 }
 0x3ef   :  { %938 = vst [vmem:[#allocation11] sm:$0xff] %v937_v27 }
 0x3f0   :  { %1343 = shalt.err (!%p1340_p2)
}
 0x3f1   :  { %s1344_s14 = scalar_lea.hbm %s1547_s9, 128 }
 0x3f2   :  { %p1345_p3 = scmp.ne.s32.totalorder %s1547_s9, %s1344_s14  ;;  %p1348_p4 = scmp.lt.u32.totalorder %s1344_s14, %s1547_s9 }
 0x3f4   :  { %p1350_p5 = pnand %p1348_p4, %p1345_p3 }
 0x3f6   :  { %1353 = shalt.err (!%p1350_p5)
}
 0x3f7   :  { %948 = dma.vmem_to_hbm [thread:$0]  %s946_s13, 128, %s1547_s9, [#allocation4]  }
 0x3f8   :  { %1360 = dma.done.wait [#allocation4], 128  }
 0x3f9   :  { %1361 = vsyncadd [#allocation4], 4294967168 }
 0x3fa   :  { %952 = vsyncpa [#allocation3], 1 }
 0x3fb   :  { %953 = vsyncpa [#allocation6], 1 }
 0x3fc   :  { %954 = vsyncpa [#allocation9], 1 }
 0x3fd   :  { %955 = vsyncpa [#allocation4], 1 }

</bundles_post_ra>
